<compile_context>
chip_gen: v7x
topology: tpu7x:2x2x1
jax: 0.10.0
libtpu: 0.0.40
codegen_flags: <defaults>
</compile_context>

<pallas_src>
import functools

import jax
import jax.numpy as jnp
from jax.experimental import pallas as pl
from jax.experimental.pallas import tpu as pltpu


def _round_up(n, m):
    return ((n + m - 1) // m) * m


def _mlp_kernel(x_ref, w1_ref, b1_ref, w2_ref, b2_ref, o_ref, *, ac_type):
    # hidden1: (tb, K) @ (K, H1) on the MXU, f32 accumulation, bias added once per tile.
    h = jnp.dot(x_ref[...], w1_ref[...], preferred_element_type=jnp.float32)
    h = h + b1_ref[...]

    if ac_type == "Sigmoid":
        h = jax.nn.sigmoid(h)      # exp on EUP, elementwise on VPU
    else:
        h = jnp.maximum(h, 0.0)    # ReLU on VPU

    # hidden2: (tb, H1) @ (H1, H2)
    out = jnp.dot(h, w2_ref[...], preferred_element_type=jnp.float32)
    out = out + b2_ref[...]
    o_ref[...] = out.astype(o_ref.dtype)


def network_pt_forward(x, w1, b1, w2, b2, network_ac_type="ReLU", tile_rows=16384):
    """Pallas forward pass of NetWork_PT.

    x:  (B, x_dim) float32
    w1: (x_dim, 30), b1: (30,)   (weights stored transposed vs torch nn.Linear)
    w2: (30, 10),    b2: (10,)
    returns (B, 10) float32

    The batch dimension is row-packed into lane-dense 128-wide rows (block-diagonal
    weights) and streamed tile-by-tile through a 1-D pipelined grid; weights and
    biases stay VMEM-resident across all grid steps.
    """
    B, x_dim = x.shape
    h1 = w1.shape[1]  # 30
    h2 = w2.shape[1]  # 10

    # ---- Lane-dense row packing -------------------------------------------------
    pack = max(1, 128 // x_dim)

    if pack > 1:
        Bp = _round_up(B, pack)
        xp = jnp.pad(x, ((0, Bp - B), (0, 0))) if Bp != B else x
        xr = xp.reshape(Bp // pack, pack * x_dim)            # free row-major view
        eye1 = jnp.eye(pack, dtype=w1.dtype)
        eye2 = jnp.eye(pack, dtype=w2.dtype)
        w1_p = jnp.kron(eye1, w1)                            # (pack*x_dim, pack*h1)
        w2_p = jnp.kron(eye2, w2)                            # (pack*h1,   pack*h2)
        b1_p = jnp.tile(b1, pack).reshape(1, pack * h1)
        b2_p = jnp.tile(b2, pack).reshape(1, pack * h2)
    else:
        Bp = B
        xr = x
        w1_p, w2_p = w1, w2
        b1_p = b1.reshape(1, h1)
        b2_p = b2.reshape(1, h2)

    bp = Bp // pack            # packed rows
    kx = pack * x_dim          # packed input width  (128 for x_dim=32)
    k2 = pack * h2             # packed output width (40  for x_dim=32)

    # ---- Batch tile (packed rows) -----------------------------------------------
    # Large tiles amortize the ~0.35 us per-step pipeline overhead.
    tile_packed = max(8, _round_up(max(tile_rows, 1) // pack, 8))
    tb = min(tile_packed, bp)

    # v7x megacore: with enough work, make sure the grid has >= 2 steps so the
    # "parallel" axis can actually be sharded across the 2 TensorCores.
    if bp >= 1024 and pl.cdiv(bp, tb) < 2:
        tb = _round_up(pl.cdiv(bp, 2), 8)

    # VMEM safety clamp: double-buffered f32 X + out tiles (lanes pad to 128) <= ~24 MiB,
    # comfortable under v5e's 16->32 MiB raised scoped limit and v7x's 64 MiB physical.
    row_bytes = 2 * 4 * (_round_up(kx, 128) + _round_up(k2, 128))
    tb = min(tb, max(8, ((24 * 1024 * 1024) // row_bytes) // 8 * 8))

    grid = (pl.cdiv(bp, tb),)

    # Advisory cost for XLA's scheduler (logical work, not the packed-matmul FLOPs).
    cost = pl.CostEstimate(
        flops=2 * B * (x_dim * h1 + h1 * h2),
        transcendentals=B * h1 if network_ac_type == "Sigmoid" else 0,
        bytes_accessed=4 * (B * (x_dim + h2) + w1.size + b1.size + w2.size + b2.size),
    )

    kernel = functools.partial(_mlp_kernel, ac_type=network_ac_type)

    out_packed = pl.pallas_call(
        kernel,
        out_shape=jax.ShapeDtypeStruct((bp, k2), jnp.float32),
        grid=grid,
        in_specs=[
            # X streams tile-by-tile over the (packed) batch axis.
            pl.BlockSpec((tb, kx), lambda i: (i, 0)),
            # Weights / biases: same block every step -> VMEM-resident, no re-DMA.
            pl.BlockSpec(w1_p.shape, lambda i: (0, 0)),
            pl.BlockSpec(b1_p.shape, lambda i: (0, 0)),
            pl.BlockSpec(w2_p.shape, lambda i: (0, 0)),
            pl.BlockSpec(b2_p.shape, lambda i: (0, 0)),
        ],
        out_specs=pl.BlockSpec((tb, k2), lambda i: (i, 0)),
        compiler_params=pltpu.CompilerParams(
            dimension_semantics=("parallel",),       # batch steps independent -> megacore
            vmem_limit_bytes=32 * 1024 * 1024,       # explicit headroom on all generations
        ),
        cost_estimate=cost,
    )(xr, w1_p, b1_p, w2_p, b2_p)

    out = out_packed.reshape(Bp, h2)                 # free reshape back to (Bp, 10)
    return out[:B] if Bp != B else out


def init_params(key, x_dim):
    """Deterministic init mimicking PyTorch nn.Linear default (uniform +/-1/sqrt(fan_in))."""
    k1, k2, k3, k4 = jax.random.split(key, 4)
    bound1 = 1.0 / jnp.sqrt(x_dim)
    bound2 = 1.0 / jnp.sqrt(30.0)
    w1 = jax.random.uniform(k1, (x_dim, 30), jnp.float32, -bound1, bound1)
    b1 = jax.random.uniform(k2, (30,), jnp.float32, -bound1, bound1)
    w2 = jax.random.uniform(k3, (30, 10), jnp.float32, -bound2, bound2)
    b2 = jax.random.uniform(k4, (10,), jnp.float32, -bound2, bound2)
    return w1, b1, w2, b2


def _reference(x, w1, b1, w2, b2, ac_type):
    h = x @ w1 + b1
    h = jax.nn.sigmoid(h) if ac_type == "Sigmoid" else jnp.maximum(h, 0.0)
    return h @ w2 + b2


if __name__ == "__main__":
    key = jax.random.PRNGKey(0)
    k_x, k_p, k_big = jax.random.split(key, 3)

    X_DIM = 32
    w1, b1, w2, b2 = init_params(k_p, X_DIM)

    # --- small batch (typical tiny input for this module) ---
    B = 8
    x = jax.random.normal(k_x, (B, X_DIM), jnp.float32)

    out_relu = network_pt_forward(x, w1, b1, w2, b2, "ReLU")
    out_sig = network_pt_forward(x, w1, b1, w2, b2, "Sigmoid")
    jax.block_until_ready((out_relu, out_sig))

    assert out_relu.shape == (B, 10)
    assert jnp.allclose(out_relu, _reference(x, w1, b1, w2, b2, "ReLU"), atol=1e-5)
    assert jnp.allclose(out_sig, _reference(x, w1, b1, w2, b2, "Sigmoid"), atol=1e-5)

    # --- larger batches: multi-step grid, partial final tile, megacore split,
    #     and the B % pack != 0 padded-tail path ---
    for B_big, tr in ((2048, 512), (1003, 512), (4096, 16384)):
        x_big = jax.random.normal(k_big, (B_big, X_DIM), jnp.float32)
        out_big = network_pt_forward(x_big, w1, b1, w2, b2, "ReLU", tile_rows=tr)
        jax.block_until_ready(out_big)
        assert out_big.shape == (B_big, 10)
        assert jnp.allclose(
            out_big, _reference(x_big, w1, b1, w2, b2, "ReLU"), atol=1e-4
        )

    print("KERNEL_OK")
</pallas_src>

<mosaic_0001>
module attributes {stable_mosaic.version = 11 : i64} {
  func.func @_mlp_kernel(%arg0: i32, %arg1: memref<2x128xf32, #tpu.memory_space<vmem>>, %arg2: memref<128x120xf32, #tpu.memory_space<vmem>>, %arg3: memref<1x120xf32, #tpu.memory_space<vmem>>, %arg4: memref<120x40xf32, #tpu.memory_space<vmem>>, %arg5: memref<1x40xf32, #tpu.memory_space<vmem>>, %arg6: memref<2x40xf32, #tpu.memory_space<vmem>>) attributes {dimension_semantics = [#tpu.dimension_semantics<parallel>], iteration_bounds = array<i64: 1>, scalar_prefetch = 0 : i64, scratch_operands = 0 : i64, tpu.core_type = #tpu.core_type<tc>, window_params = [{transform_indices = @transform_0, window_bounds = array<i64: 2, 128>}, {pipeline_mode = #tpu.pipeline_mode<synchronous>, transform_indices = @transform_1, window_bounds = array<i64: 128, 120>}, {pipeline_mode = #tpu.pipeline_mode<synchronous>, transform_indices = @transform_2, window_bounds = array<i64: 1, 120>}, {pipeline_mode = #tpu.pipeline_mode<synchronous>, transform_indices = @transform_3, window_bounds = array<i64: 120, 40>}, {pipeline_mode = #tpu.pipeline_mode<synchronous>, transform_indices = @transform_4, window_bounds = array<i64: 1, 40>}, {transform_indices = @transform_5, window_bounds = array<i64: 2, 40>}]} {
    %c0 = arith.constant 0 : index
    %c0_0 = arith.constant 0 : index
    %0 = vector.load %arg1[%c0, %c0_0] : memref<2x128xf32, #tpu.memory_space<vmem>>, vector<2x128xf32>
    %c0_1 = arith.constant 0 : index
    %c0_2 = arith.constant 0 : index
    %1 = vector.load %arg2[%c0_1, %c0_2] : memref<128x120xf32, #tpu.memory_space<vmem>>, vector<128x120xf32>
    %cst = arith.constant dense<0.000000e+00> : vector<2x120xf32>
    %2 = tpu.matmul %0, %1, %cst {dimension_numbers = #tpu.dot_dimension_numbers<[1], [0], [0], [1], [0, 0, 1, 1], [], []>} : vector<2x128xf32>, vector<128x120xf32>, vector<2x120xf32> -> vector<2x120xf32>
    %c0_3 = arith.constant 0 : index
    %c0_4 = arith.constant 0 : index
    %3 = vector.load %arg3[%c0_3, %c0_4] : memref<1x120xf32, #tpu.memory_space<vmem>>, vector<1x120xf32>
    %4 = vector.broadcast %3 : vector<1x120xf32> to vector<2x120xf32>
    %5 = arith.addf %2, %4 : vector<2x120xf32>
    %cst_5 = arith.constant 0.000000e+00 : f32
    %6 = vector.broadcast %cst_5 : f32 to vector<2x120xf32>
    %7 = arith.maximumf %5, %6 : vector<2x120xf32>
    %c0_6 = arith.constant 0 : index
    %c0_7 = arith.constant 0 : index
    %8 = vector.load %arg4[%c0_6, %c0_7] : memref<120x40xf32, #tpu.memory_space<vmem>>, vector<120x40xf32>
    %cst_8 = arith.constant dense<0.000000e+00> : vector<2x40xf32>
    %9 = tpu.matmul %7, %8, %cst_8 {dimension_numbers = #tpu.dot_dimension_numbers<[1], [0], [0], [1], [0, 0, 1, 1], [], []>} : vector<2x120xf32>, vector<120x40xf32>, vector<2x40xf32> -> vector<2x40xf32>
    %c0_9 = arith.constant 0 : index
    %c0_10 = arith.constant 0 : index
    %10 = vector.load %arg5[%c0_9, %c0_10] : memref<1x40xf32, #tpu.memory_space<vmem>>, vector<1x40xf32>
    %11 = vector.broadcast %10 : vector<1x40xf32> to vector<2x40xf32>
    %12 = arith.addf %9, %11 : vector<2x40xf32>
    %c0_11 = arith.constant 0 : index
    %c0_12 = arith.constant 0 : index
    %13 = vector.load %arg6[%c0_11, %c0_12] : memref<2x40xf32, #tpu.memory_space<vmem>>, vector<2x40xf32>
    tpu.vector_store %arg6[%c0_11, %c0_12], %12 {strides = array<i32>} : memref<2x40xf32, #tpu.memory_space<vmem>>, vector<2x40xf32>,
    return
  }
  func.func @transform_0(%arg0: i32) -> (i32, i32) {
    %c0_i32 = arith.constant 0 : i32
    %c0_i32_0 = arith.constant 0 : i32
    return %arg0, %c0_i32 : i32, i32
  }
  func.func @transform_1(%arg0: i32) -> (i32, i32) {
    %c0_i32 = arith.constant 0 : i32
    %c0_i32_0 = arith.constant 0 : i32
    %c0_i32_1 = arith.constant 0 : i32
    return %c0_i32, %c0_i32_0 : i32, i32
  }
  func.func @transform_2(%arg0: i32) -> (i32, i32) {
    %c0_i32 = arith.constant 0 : i32
    %c0_i32_0 = arith.constant 0 : i32
    %c0_i32_1 = arith.constant 0 : i32
    return %c0_i32, %c0_i32_0 : i32, i32
  }
  func.func @transform_3(%arg0: i32) -> (i32, i32) {
    %c0_i32 = arith.constant 0 : i32
    %c0_i32_0 = arith.constant 0 : i32
    %c0_i32_1 = arith.constant 0 : i32
    return %c0_i32, %c0_i32_0 : i32, i32
  }
  func.func @transform_4(%arg0: i32) -> (i32, i32) {
    %c0_i32 = arith.constant 0 : i32
    %c0_i32_0 = arith.constant 0 : i32
    %c0_i32_1 = arith.constant 0 : i32
    return %c0_i32, %c0_i32_0 : i32, i32
  }
  func.func @transform_5(%arg0: i32) -> (i32, i32) {
    %c0_i32 = arith.constant 0 : i32
    %c0_i32_0 = arith.constant 0 : i32
    return %arg0, %c0_i32 : i32, i32
  }
}

</mosaic_0001>

<bundles_post_ra>
// kernel: tpu_custom_call.1
= control target key start
LH: loop header
LB: loop body
LE: loop exit
PB: predicated region body
PF: predicated region fallthrough
CT: control target
= control target key end

     0   :  { %v405_v3 = vmov 0.0|0.0   ;;  %vm406_vm0 = vmmov 0   ;;  %v407_v6 = vmov 0.0   ;;  %s571_s0 = inlined_call_operand.vmem [shape: f32[2,128], index: 0, kind: input, shape index: {}]   ;;  %s572_s1 = inlined_call_operand.vmem [shape: f32[128,120], index: 1, kind: input, shape index: {}]   ;;  %s573_s2 = inlined_call_operand.vmem [shape: f32[1,120], index: 2, kind: input, shape index: {}]   ;;  %s574_s3 = inlined_call_operand.vmem [shape: f32[120,40], index: 3, kind: input, shape index: {}]   ;;  %s575_s4 = inlined_call_operand.vmem [shape: f32[1,40], index: 4, kind: input, shape index: {}]   ;;  %s576_s5 = inlined_call_operand.hbm [shape: f32[2,40], index: 5, kind: output, shape index: {}]  }
   0x1   :  { %v22_v0 = vld [vmem:[%s572_s1] sm:$0xff]  ;;  %v23_v1 = vld [vmem:[%s572_s1 + $0x8] sm:$0xff]  ;;  %v24_v2 = vld [vmem:[%s572_s1 + $0x10] sm:$0xff]  ;;  %332 = vmatprep.subr.bf16.mxu0 %v405_v3  ;;  %296 = vmatprep.mubr.msk.f32.mxu0 %vm406_vm0, %v407_v6 }
   0x2   :  { %v333_v4 = vpack.c.bf16 %v23_v1, %v22_v0  ;;  %v25_v5 = vld [vmem:[%s572_s1 + $0x18] sm:$0xff]  ;;  %356 = vmatprep.subr.bf16.mxu1 %v405_v3  ;;  %329 = vmatprep.mubr.msk.f32.mxu1 %vm406_vm0, %v407_v6  ;;  %v26_v8 = vld [vmem:[%s572_s1 + $0x20] sm:$0xff]  ;;  %v27_v9 = vld [vmem:[%s572_s1 + $0x28] sm:$0xff] }
   0x3   :  { %v336_v7 = vpack.c.bf16 %v25_v5, %v24_v2  ;;  %v116_v10 = vld [vmem:[%s574_s3] sm:$0xff]  ;;  %v117_v11 = vld [vmem:[%s574_s3 + $0x8] sm:$0xff]  ;;  %v118_v12 = vld [vmem:[%s574_s3 + $0x10] sm:$0xff]  ;;  %v339_v14 = vpack.c.bf16 %v27_v9, %v26_v8 }
   0x4   :  { %334 = vmatpush3.bf16.msra.mxu0 %v333_v4  ;;  %v119_v13 = vld [vmem:[%s574_s3 + $0x18] sm:$0xff]  ;;  %v357_v15 = vpack.c.bf16 %v117_v11, %v116_v10  ;;  %v28_v16 = vld [vmem:[%s572_s1 + $0x30] sm:$0xff]  ;;  %v120_v19 = vld [vmem:[%s574_s3 + $0x20] sm:$0xff] }
   0x5   :  { %335 = vmatprep.subr.bf16.mxu0 %v405_v3  ;;  %v29_v17 = vld [vmem:[%s572_s1 + $0x38] sm:$0xff]  ;;  %v360_v18 = vpack.c.bf16 %v119_v13, %v118_v12  ;;  %v121_v20 = vld [vmem:[%s574_s3 + $0x28] sm:$0xff] }
   0x6   :  { %358 = vmatpush3.bf16.msra.mxu1 %v357_v15 }
   0x7   :  { %359 = vmatprep.subr.bf16.mxu1 %v405_v3 }
   0x8   :  { %337 = vmatpush3.bf16.msra.mxu0 %v336_v7 }
   0x9   :  { %338 = vmatprep.subr.bf16.mxu0 %v405_v3 }
   0xa   :  { %10 = vsyncpa [#allocation3], 0  ;;  %v342_v21 = vpack.c.bf16 %v29_v17, %v28_v16  ;;  %v30_v22 = vld [vmem:[%s572_s1 + $0x40] sm:$0xff]  ;;  %v31_v23 = vld [vmem:[%s572_s1 + $0x48] sm:$0xff]  ;;  %361 = vmatpush3.bf16.msra.mxu1 %v360_v18  ;;  %v363_v24 = vpack.c.bf16 %v121_v20, %v120_v19  ;;  %vm138_vm1 = vcmask 982016   ;;  %s408_s9 = smov [#allocation2]  }
   0xb   :  { %362 = vmatprep.subr.bf16.mxu1 %v405_v3  ;;  %v122_v25 = vld [vmem:[%s574_s3 + $0x30] sm:$0xff]  ;;  %v123_v26 = vld [vmem:[%s574_s3 + $0x38] sm:$0xff]  ;;  %v345_v27 = vpack.c.bf16 %v31_v23, %v30_v22  ;;  %v124_v31 = vld [vmem:[%s574_s3 + $0x40] sm:$0xff]  ;;  %s220_s10 = sshll.u32 %s408_s9, 4  ;;  %vm212_vm2 = vcmask 320512   ;;  %s221_s10 = int_to_ptr.vmem [resolvable:$true] %s220_s10 }
   0xc   :  { %340 = vmatpush3.bf16.msra.mxu0 %v339_v14  ;;  %v32_v28 = vld [vmem:[%s572_s1 + $0x50] sm:$0xff]  ;;  %v33_v29 = vld [vmem:[%s572_s1 + $0x58] sm:$0xff]  ;;  %v366_v30 = vpack.c.bf16 %v123_v26, %v122_v25  ;;  %v125_v32 = vld [vmem:[%s574_s3 + $0x48] sm:$0xff]  ;;  %p386_p1 = scmp.lt.s32.totalorder %s221_s10, %s221_s10 }
   0xd   :  { %341 = vmatprep.subr.bf16.mxu0 %v405_v3  ;;  %v348_v33 = vpack.c.bf16 %v33_v29, %v32_v28  ;;  %v34_v34 = vld [vmem:[%s572_s1 + $0x60] sm:$0xff]  ;;  %v35_v35 = vld [vmem:[%s572_s1 + $0x68] sm:$0xff]  ;;  %v369_v36 = vpack.c.bf16 %v125_v32, %v124_v31  ;;  %v126_v37 = vld [vmem:[%s574_s3 + $0x50] sm:$0xff] }
   0xe   :  { %364 = vmatpush3.bf16.msra.mxu1 %v363_v24  ;;  %v127_v38 = vld [vmem:[%s574_s3 + $0x58] sm:$0xff]  ;;  %v351_v39 = vpack.c.bf16 %v35_v35, %v34_v34  ;;  %v36_v40 = vld [vmem:[%s572_s1 + $0x70] sm:$0xff]  ;;  %v21_v44 = vld [vmem:[%s571_s0] sm:$0x3] }
   0xf   :  { %365 = vmatprep.subr.bf16.mxu1 %v405_v3  ;;  %v37_v41 = vld [vmem:[%s572_s1 + $0x78] sm:$0xff]  ;;  %v372_v42 = vpack.c.bf16 %v127_v38, %v126_v37  ;;  %v128_v45 = vld [vmem:[%s574_s3 + $0x60] sm:$0xff]  ;;  %v129_v46 = vld [vmem:[%s574_s3 + $0x68] sm:$0xff] }
  0x10   :  { %343 = vmatpush3.bf16.msra.mxu0 %v342_v21  ;;  %v354_v43 = vpack.c.bf16 %v37_v41, %v36_v40  ;;  %v375_v47 = vpack.c.bf16 %v129_v46, %v128_v45  ;;  %v130_v48 = vld [vmem:[%s574_s3 + $0x70] sm:$0xff]  ;;  %v228_v49 = vld [vmem:[%s573_s2] ss:$0 sm:$0xff]  ;;  %s381_s3 = scalar_lea.vmem %s221_s10, 32 }
  0x11   :  { %344 = vmatprep.subr.bf16.mxu0 %v405_v3  ;;  %v229_v54 = vld [vmem:[%s575_s4] ss:$0 sm:$0xff]  ;;  %p382_p0 = scmp.ne.s32.totalorder %s221_s10, %s381_s3  ;;  %p387_p2 = scmp.lt.s32.totalorder %s381_s3, %s381_s3 }
  0x12   :  { %367 = vmatpush3.bf16.msra.mxu1 %v366_v30 }
  0x13   :  { %368 = vmatprep.subr.bf16.mxu1 %v405_v3  ;;  %p388_p3 = por %p387_p2, %p386_p1 }
  0x14   :  { %346 = vmatpush3.bf16.msra.mxu0 %v345_v27 }
  0x15   :  { %347 = vmatprep.subr.bf16.mxu0 %v405_v3  ;;  %p389_p4 = pnand %p388_p3, %p382_p0 }
  0x16   :  { %370 = vmatpush3.bf16.msra.mxu1 %v369_v36 }
  0x17   :  { %371 = vmatprep.subr.bf16.mxu1 %v405_v3 }
  0x18   :  { %349 = vmatpush3.bf16.msra.mxu0 %v348_v33 }
  0x19   :  { %350 = vmatprep.subr.bf16.mxu0 %v405_v3 }
  0x1a   :  { %373 = vmatpush3.bf16.msra.mxu1 %v372_v42 }
  0x1b   :  { %374 = vmatprep.subr.bf16.mxu1 %v405_v3 }
  0x1c   :  { %352 = vmatpush3.bf16.msra.mxu0 %v351_v39 }
  0x1d   :  { %353 = vmatprep.subr.bf16.mxu0 %v405_v3 }
  0x1e   :  { %376 = vmatpush3.bf16.msra.mxu1 %v375_v47 }
  0x1f   :  { %327 = vmatprep.subr.mxu1 %v407_v6 }
  0x20   :  { %355 = vmatpush3.bf16.msra.mxu0 %v354_v43 }
  0x22   :  { %328 = vmatpush3.msra.mxu1 %v130_v48 }
  0x23   :  { %297 = vmatmul.mubr.f32.vlgmr.msra.gmra.mrb[0].mxu0 %v21_v44 }
  0xf6   :  { %v111_v50 = vpop.f32.mrb[0].mxu0 }
  0xf7   :  { %v112_v51 = vadd.f32 %v228_v49, %v111_v50  ;;  %v298_v52 = vpop.f32.mrb[1].mxu0 }
  0xf9   :  { %v115_v53 = vmax.f32 %v112_v51, 0.0 }
  0xfb   :  { %330 = vmatmul.mubr.msk.f32.vlgmr.msra.gmra.mrb[0].mxu1 %vm138_vm1, %v115_v53 }
 0x1ce   :  { %v208_v55 = vpop.f32.mrb[0].mxu1 }
 0x1cf   :  { %v209_v56 = vadd.f32 %v229_v54, %v208_v55  ;;  %v331_v57 = vpop.f32.mrb[1].mxu1 }
 0x1d1   :  { %213 = vst.msk [vmem:[#allocation2] sm:$0x3] %vm212_vm2, %v209_v56 }
 0x1d2   :  { %392 = shalt.err (!%p389_p4)
}
 0x1d3   :  { %s393_s12 = scalar_lea.hbm %s576_s5, 32 }
 0x1d4   :  { %p394_p5 = scmp.ne.s32.totalorder %s576_s5, %s393_s12  ;;  %p397_p6 = scmp.lt.u32.totalorder %s393_s12, %s576_s5 }
 0x1d6   :  { %p399_p7 = pnand %p397_p6, %p394_p5 }
 0x1d8   :  { %402 = shalt.err (!%p399_p7)
}
 0x1d9   :  { %223 = dma.vmem_to_hbm [thread:$0]  %s221_s10, 32, %s576_s5, [#allocation3]  }
 0x1da   :  { %403 = dma.done.wait [#allocation3], 32  }
 0x1db   :  { %404 = vsyncadd [#allocation3], 4294967264 }
 0x1dc   :  { %227 = vsyncpa [#allocation3], 1 }

</bundles_post_ra>
